<compile_context>
chip_gen: v7x
topology: tpu7x:2x2x1
jax: 0.10.0
libtpu: 0.0.40
codegen_flags: <defaults>
</compile_context>

<pallas_src>
import functools

import jax
import jax.numpy as jnp
from jax import lax
from jax.experimental import pallas as pl
from jax.experimental.pallas import tpu as pltpu


def small_basic_block_kernel(x_ref, masks_ref,
                             w1_ref, b1_ref,
                             w2u_ref, w2c_ref, w2d_ref, b2_ref,
                             w3l_ref, w3c_ref, w3r_ref, b3_ref,
                             w4_ref, b4_ref,
                             o_ref, *, W):
    """Single-step kernel, channel-major layout with batch folded into lanes.

    x_ref   : (Cin, Lp)   flattened pixels, p = n*H*W + h*W + w (Lp = padded lanes)
    masks   : (4, Lp)     [up, down, left, right] validity masks (1.0 / 0.0)
    w1      : (cm, Cin)   1x1 conv
    w2{u,c,d}: (cm, cm)   (3,1) conv taps (row h-1 / h / h+1)
    w3{l,c,r}: (cm, cm)   (1,3) conv taps (col w-1 / w / w+1)
    w4      : (Cout, cm)  1x1 conv
    b*      : (C, 1)      biases (broadcast over the lane/pixel axis)
    """
    x = x_ref[...]                                   # (Cin, Lp)
    Lp = x.shape[1]

    m_up, m_dn = masks_ref[0:1, :], masks_ref[1:2, :]
    m_lf, m_rt = masks_ref[2:3, :], masks_ref[3:4, :]

    # --- Conv2d(ch_in, cm, 1) + ReLU ----------------------------------------
    h1 = jnp.dot(w1_ref[...], x, preferred_element_type=jnp.float32) + b1_ref[...]
    h1 = jnp.maximum(h1, 0.0)

    # --- Conv2d(cm, cm, (3,1), padding=(1,0)) + ReLU ------------------------
    # Vertical neighbours are +/- W lanes away; XLU lane rolls + border masks,
    # three taps as three accumulated MXU matmuls (no sublane concatenate).
    up = pltpu.roll(h1, W, axis=1) * m_up            # holds x(h-1, w)
    dn = pltpu.roll(h1, Lp - W, axis=1) * m_dn       # holds x(h+1, w)
    h2 = (jnp.dot(w2c_ref[...], h1, preferred_element_type=jnp.float32)
          + jnp.dot(w2u_ref[...], up, preferred_element_type=jnp.float32)
          + jnp.dot(w2d_ref[...], dn, preferred_element_type=jnp.float32)
          + b2_ref[...])
    h2 = jnp.maximum(h2, 0.0)

    # --- Conv2d(cm, cm, (1,3), padding=(0,1)) + ReLU ------------------------
    lf = pltpu.roll(h2, 1, axis=1) * m_lf            # holds x(h, w-1)
    rt = pltpu.roll(h2, Lp - 1, axis=1) * m_rt       # holds x(h, w+1)
    h3 = (jnp.dot(w3c_ref[...], h2, preferred_element_type=jnp.float32)
          + jnp.dot(w3l_ref[...], lf, preferred_element_type=jnp.float32)
          + jnp.dot(w3r_ref[...], rt, preferred_element_type=jnp.float32)
          + b3_ref[...])
    h3 = jnp.maximum(h3, 0.0)

    # --- Conv2d(cm, ch_out, 1) ----------------------------------------------
    out = jnp.dot(w4_ref[...], h3, preferred_element_type=jnp.float32) + b4_ref[...]
    o_ref[...] = out.astype(o_ref.dtype)


def pack_params(params, N, H, W):
    """Hoisted, call-once preprocessing: tap splitting, bias reshape, masks."""
    cm = params["w1"].shape[0]
    HW = H * W
    L = N * HW
    Lp = ((L + 127) // 128) * 128          # keep the lane axis 128-dense

    # Border-validity masks per flattened (n, h, w) position. They zero both
    # the image-seam wrap-around of pltpu.roll and any pad-lane contamination.
    p = jnp.arange(Lp, dtype=jnp.int32)
    valid = p < L
    r = (p % HW) // W
    c = p % W
    masks = jnp.stack(
        [valid & (r > 0), valid & (r < H - 1),
         valid & (c > 0), valid & (c < W - 1)],
        axis=0).astype(jnp.float32)                                    # (4, Lp)

    packed = {
        "masks": masks,
        "w1": params["w1"][:, :, 0, 0],                                # (cm, Cin)
        "b1": params["b1"][:, None],
        "w2u": params["w2"][:, :, 0, 0],                               # tap h-1
        "w2c": params["w2"][:, :, 1, 0],                               # tap h
        "w2d": params["w2"][:, :, 2, 0],                               # tap h+1
        "b2": params["b2"][:, None],
        "w3l": params["w3"][:, :, 0, 0],                               # tap w-1
        "w3c": params["w3"][:, :, 0, 1],                               # tap w
        "w3r": params["w3"][:, :, 0, 2],                               # tap w+1
        "b3": params["b3"][:, None],
        "w4": params["w4"][:, :, 0, 0],                                # (Cout, cm)
        "b4": params["b4"][:, None],
    }
    packed = jax.tree_util.tree_map(jnp.asarray, packed)
    return packed, Lp


def small_basic_block_pallas(x_nchw, packed, Lp):
    """Hot path: fold batch into lanes, one pallas_call, unfold."""
    N, Cin, H, W = x_nchw.shape
    Cout = packed["w4"].shape[0]
    cm = packed["w1"].shape[0]
    L = N * H * W

    # (N, Cin, H, W) -> (Cin, N*H*W); pad lanes up to Lp if needed.
    x = jnp.transpose(x_nchw, (1, 0, 2, 3)).reshape(Cin, L)
    if Lp != L:
        x = jnp.pad(x, ((0, 0), (0, Lp - L)))

    full = lambda shape: pl.BlockSpec(shape, lambda i: (0, 0))
    kernel = functools.partial(small_basic_block_kernel, W=W)

    out = pl.pallas_call(
        kernel,
        out_shape=jax.ShapeDtypeStruct((Cout, Lp), jnp.float32),
        grid=(1,),
        in_specs=[
            full((Cin, Lp)),           # x
            full((4, Lp)),             # masks
            full((cm, Cin)),           # w1
            full((cm, 1)),             # b1
            full((cm, cm)),            # w2u
            full((cm, cm)),            # w2c
            full((cm, cm)),            # w2d
            full((cm, 1)),             # b2
            full((cm, cm)),            # w3l
            full((cm, cm)),            # w3c
            full((cm, cm)),            # w3r
            full((cm, 1)),             # b3
            full((Cout, cm)),          # w4
            full((Cout, 1)),           # b4
        ],
        out_specs=full((Cout, Lp)),
    )(x, packed["masks"],
      packed["w1"], packed["b1"],
      packed["w2u"], packed["w2c"], packed["w2d"], packed["b2"],
      packed["w3l"], packed["w3c"], packed["w3r"], packed["b3"],
      packed["w4"], packed["b4"])

    # (Cout, N*H*W) -> NCHW.
    return jnp.transpose(out[:, :L].reshape(Cout, N, H, W), (1, 0, 2, 3))


def small_basic_block_ref(x, params):
    """Pure-JAX reference matching PyTorch nn.Conv2d semantics (NCHW/OIHW)."""
    dn = ("NCHW", "OIHW", "NCHW")
    y = lax.conv_general_dilated(x, params["w1"], (1, 1), [(0, 0), (0, 0)],
                                 dimension_numbers=dn)
    y = jax.nn.relu(y + params["b1"][None, :, None, None])
    y = lax.conv_general_dilated(y, params["w2"], (1, 1), [(1, 1), (0, 0)],
                                 dimension_numbers=dn)
    y = jax.nn.relu(y + params["b2"][None, :, None, None])
    y = lax.conv_general_dilated(y, params["w3"], (1, 1), [(0, 0), (1, 1)],
                                 dimension_numbers=dn)
    y = jax.nn.relu(y + params["b3"][None, :, None, None])
    y = lax.conv_general_dilated(y, params["w4"], (1, 1), [(0, 0), (0, 0)],
                                 dimension_numbers=dn)
    return y + params["b4"][None, :, None, None]


def init_params(key, ch_in, ch_out):
    cm = ch_out // 4
    ks = jax.random.split(key, 8)
    f32 = jnp.float32
    return {
        "w1": jax.random.normal(ks[0], (cm, ch_in, 1, 1), f32) * 0.1,
        "b1": jax.random.normal(ks[1], (cm,), f32) * 0.01,
        "w2": jax.random.normal(ks[2], (cm, cm, 3, 1), f32) * 0.1,
        "b2": jax.random.normal(ks[3], (cm,), f32) * 0.01,
        "w3": jax.random.normal(ks[4], (cm, cm, 1, 3), f32) * 0.1,
        "b3": jax.random.normal(ks[5], (cm,), f32) * 0.01,
        "w4": jax.random.normal(ks[6], (ch_out, cm, 1, 1), f32) * 0.1,
        "b4": jax.random.normal(ks[7], (ch_out,), f32) * 0.01,
    }


if __name__ == "__main__":
    key = jax.random.PRNGKey(0)
    k_x, k_p = jax.random.split(key)

    N, CH_IN, CH_OUT, H, W = 2, 4, 16, 16, 16
    x = jax.random.normal(k_x, (N, CH_IN, H, W), jnp.float32)
    params = init_params(k_p, CH_IN, CH_OUT)

    # One-time preprocessing (hoisted out of the hot path).
    packed, Lp = pack_params(params, N, H, W)
    packed = jax.block_until_ready(packed)

    out = small_basic_block_pallas(x, packed, Lp)
    out = jax.block_until_ready(out)

    ref = small_basic_block_ref(x, params)
    assert out.shape == (N, CH_OUT, H, W), out.shape
    assert jnp.allclose(out, ref, rtol=1e-4, atol=1e-4), float(
        jnp.max(jnp.abs(out - ref)))

    print("KERNEL_OK")
</pallas_src>

<mosaic_0001>
module attributes {stable_mosaic.version = 11 : i64} {
  func.func @small_basic_block_kernel(%arg0: i32, %arg1: memref<4x512xf32, #tpu.memory_space<vmem>>, %arg2: memref<4x512xf32, #tpu.memory_space<vmem>>, %arg3: memref<4x4xf32, #tpu.memory_space<vmem>>, %arg4: memref<4x1xf32, #tpu.memory_space<vmem>>, %arg5: memref<4x4xf32, #tpu.memory_space<vmem>>, %arg6: memref<4x4xf32, #tpu.memory_space<vmem>>, %arg7: memref<4x4xf32, #tpu.memory_space<vmem>>, %arg8: memref<4x1xf32, #tpu.memory_space<vmem>>, %arg9: memref<4x4xf32, #tpu.memory_space<vmem>>, %arg10: memref<4x4xf32, #tpu.memory_space<vmem>>, %arg11: memref<4x4xf32, #tpu.memory_space<vmem>>, %arg12: memref<4x1xf32, #tpu.memory_space<vmem>>, %arg13: memref<16x4xf32, #tpu.memory_space<vmem>>, %arg14: memref<16x1xf32, #tpu.memory_space<vmem>>, %arg15: memref<16x512xf32, #tpu.memory_space<vmem>>) attributes {dimension_semantics = [#tpu.dimension_semantics<arbitrary>], iteration_bounds = array<i64: 1>, scalar_prefetch = 0 : i64, scratch_operands = 0 : i64, tpu.core_type = #tpu.core_type<tc>, window_params = [{pipeline_mode = #tpu.pipeline_mode<synchronous>, transform_indices = @transform_0, window_bounds = array<i64: 4, 512>}, {pipeline_mode = #tpu.pipeline_mode<synchronous>, transform_indices = @transform_1, window_bounds = array<i64: 4, 512>}, {pipeline_mode = #tpu.pipeline_mode<synchronous>, transform_indices = @transform_2, window_bounds = array<i64: 4, 4>}, {pipeline_mode = #tpu.pipeline_mode<synchronous>, transform_indices = @transform_3, window_bounds = array<i64: 4, 1>}, {pipeline_mode = #tpu.pipeline_mode<synchronous>, transform_indices = @transform_4, window_bounds = array<i64: 4, 4>}, {pipeline_mode = #tpu.pipeline_mode<synchronous>, transform_indices = @transform_5, window_bounds = array<i64: 4, 4>}, {pipeline_mode = #tpu.pipeline_mode<synchronous>, transform_indices = @transform_6, window_bounds = array<i64: 4, 4>}, {pipeline_mode = #tpu.pipeline_mode<synchronous>, transform_indices = @transform_7, window_bounds = array<i64: 4, 1>}, {pipeline_mode = #tpu.pipeline_mode<synchronous>, transform_indices = @transform_8, window_bounds = array<i64: 4, 4>}, {pipeline_mode = #tpu.pipeline_mode<synchronous>, transform_indices = @transform_9, window_bounds = array<i64: 4, 4>}, {pipeline_mode = #tpu.pipeline_mode<synchronous>, transform_indices = @transform_10, window_bounds = array<i64: 4, 4>}, {pipeline_mode = #tpu.pipeline_mode<synchronous>, transform_indices = @transform_11, window_bounds = array<i64: 4, 1>}, {pipeline_mode = #tpu.pipeline_mode<synchronous>, transform_indices = @transform_12, window_bounds = array<i64: 16, 4>}, {pipeline_mode = #tpu.pipeline_mode<synchronous>, transform_indices = @transform_13, window_bounds = array<i64: 16, 1>}, {pipeline_mode = #tpu.pipeline_mode<synchronous>, transform_indices = @transform_14, window_bounds = array<i64: 16, 512>}]} {
    %c0 = arith.constant 0 : index
    %c0_0 = arith.constant 0 : index
    %0 = vector.load %arg1[%c0, %c0_0] : memref<4x512xf32, #tpu.memory_space<vmem>>, vector<4x512xf32>
    %c0_1 = arith.constant 0 : index
    %c0_2 = arith.constant 0 : index
    %1 = vector.load %arg2[%c0_1, %c0_2] : memref<4x512xf32, #tpu.memory_space<vmem>>, vector<1x512xf32>
    %c1 = arith.constant 1 : index
    %c0_3 = arith.constant 0 : index
    %2 = vector.load %arg2[%c1, %c0_3] : memref<4x512xf32, #tpu.memory_space<vmem>>, vector<1x512xf32>
    %c2 = arith.constant 2 : index
    %c0_4 = arith.constant 0 : index
    %3 = vector.load %arg2[%c2, %c0_4] : memref<4x512xf32, #tpu.memory_space<vmem>>, vector<1x512xf32>
    %c3 = arith.constant 3 : index
    %c0_5 = arith.constant 0 : index
    %4 = vector.load %arg2[%c3, %c0_5] : memref<4x512xf32, #tpu.memory_space<vmem>>, vector<1x512xf32>
    %c0_6 = arith.constant 0 : index
    %c0_7 = arith.constant 0 : index
    %5 = vector.load %arg3[%c0_6, %c0_7] : memref<4x4xf32, #tpu.memory_space<vmem>>, vector<4x4xf32>
    %cst = arith.constant dense<0.000000e+00> : vector<4x512xf32>
    %6 = tpu.matmul %5, %0, %cst {dimension_numbers = #tpu.dot_dimension_numbers<[1], [0], [0], [1], [0, 0, 1, 1], [], []>} : vector<4x4xf32>, vector<4x512xf32>, vector<4x512xf32> -> vector<4x512xf32>
    %c0_8 = arith.constant 0 : index
    %c0_9 = arith.constant 0 : index
    %7 = vector.load %arg4[%c0_8, %c0_9] : memref<4x1xf32, #tpu.memory_space<vmem>>, vector<4x1xf32>
    %8 = vector.broadcast %7 : vector<4x1xf32> to vector<4x512xf32>
    %9 = arith.addf %6, %8 : vector<4x512xf32>
    %cst_10 = arith.constant 0.000000e+00 : f32
    %10 = vector.broadcast %cst_10 : f32 to vector<4x512xf32>
    %11 = arith.maximumf %9, %10 : vector<4x512xf32>
    %c16_i32 = arith.constant 16 : i32
    %12 = tpu.dynamic_rotate %11 by %c16_i32 dim 1 : vector<4x512xf32>, i32 -> vector<4x512xf32>
    %13 = vector.broadcast %1 : vector<1x512xf32> to vector<4x512xf32>
    %14 = arith.mulf %12, %13 : vector<4x512xf32>
    %c496_i32 = arith.constant 496 : i32
    %15 = tpu.dynamic_rotate %11 by %c496_i32 dim 1 : vector<4x512xf32>, i32 -> vector<4x512xf32>
    %16 = vector.broadcast %2 : vector<1x512xf32> to vector<4x512xf32>
    %17 = arith.mulf %15, %16 : vector<4x512xf32>
    %c0_11 = arith.constant 0 : index
    %c0_12 = arith.constant 0 : index
    %18 = vector.load %arg6[%c0_11, %c0_12] : memref<4x4xf32, #tpu.memory_space<vmem>>, vector<4x4xf32>
    %cst_13 = arith.constant dense<0.000000e+00> : vector<4x512xf32>
    %19 = tpu.matmul %18, %11, %cst_13 {dimension_numbers = #tpu.dot_dimension_numbers<[1], [0], [0], [1], [0, 0, 1, 1], [], []>} : vector<4x4xf32>, vector<4x512xf32>, vector<4x512xf32> -> vector<4x512xf32>
    %c0_14 = arith.constant 0 : index
    %c0_15 = arith.constant 0 : index
    %20 = vector.load %arg5[%c0_14, %c0_15] : memref<4x4xf32, #tpu.memory_space<vmem>>, vector<4x4xf32>
    %cst_16 = arith.constant dense<0.000000e+00> : vector<4x512xf32>
    %21 = tpu.matmul %20, %14, %cst_16 {dimension_numbers = #tpu.dot_dimension_numbers<[1], [0], [0], [1], [0, 0, 1, 1], [], []>} : vector<4x4xf32>, vector<4x512xf32>, vector<4x512xf32> -> vector<4x512xf32>
    %22 = arith.addf %19, %21 : vector<4x512xf32>
    %c0_17 = arith.constant 0 : index
    %c0_18 = arith.constant 0 : index
    %23 = vector.load %arg7[%c0_17, %c0_18] : memref<4x4xf32, #tpu.memory_space<vmem>>, vector<4x4xf32>
    %cst_19 = arith.constant dense<0.000000e+00> : vector<4x512xf32>
    %24 = tpu.matmul %23, %17, %cst_19 {dimension_numbers = #tpu.dot_dimension_numbers<[1], [0], [0], [1], [0, 0, 1, 1], [], []>} : vector<4x4xf32>, vector<4x512xf32>, vector<4x512xf32> -> vector<4x512xf32>
    %25 = arith.addf %22, %24 : vector<4x512xf32>
    %c0_20 = arith.constant 0 : index
    %c0_21 = arith.constant 0 : index
    %26 = vector.load %arg8[%c0_20, %c0_21] : memref<4x1xf32, #tpu.memory_space<vmem>>, vector<4x1xf32>
    %27 = vector.broadcast %26 : vector<4x1xf32> to vector<4x512xf32>
    %28 = arith.addf %25, %27 : vector<4x512xf32>
    %cst_22 = arith.constant 0.000000e+00 : f32
    %29 = vector.broadcast %cst_22 : f32 to vector<4x512xf32>
    %30 = arith.maximumf %28, %29 : vector<4x512xf32>
    %c1_i32 = arith.constant 1 : i32
    %31 = tpu.dynamic_rotate %30 by %c1_i32 dim 1 : vector<4x512xf32>, i32 -> vector<4x512xf32>
    %32 = vector.broadcast %3 : vector<1x512xf32> to vector<4x512xf32>
    %33 = arith.mulf %31, %32 : vector<4x512xf32>
    %c511_i32 = arith.constant 511 : i32
    %34 = tpu.dynamic_rotate %30 by %c511_i32 dim 1 : vector<4x512xf32>, i32 -> vector<4x512xf32>
    %35 = vector.broadcast %4 : vector<1x512xf32> to vector<4x512xf32>
    %36 = arith.mulf %34, %35 : vector<4x512xf32>
    %c0_23 = arith.constant 0 : index
    %c0_24 = arith.constant 0 : index
    %37 = vector.load %arg10[%c0_23, %c0_24] : memref<4x4xf32, #tpu.memory_space<vmem>>, vector<4x4xf32>
    %cst_25 = arith.constant dense<0.000000e+00> : vector<4x512xf32>
    %38 = tpu.matmul %37, %30, %cst_25 {dimension_numbers = #tpu.dot_dimension_numbers<[1], [0], [0], [1], [0, 0, 1, 1], [], []>} : vector<4x4xf32>, vector<4x512xf32>, vector<4x512xf32> -> vector<4x512xf32>
    %c0_26 = arith.constant 0 : index
    %c0_27 = arith.constant 0 : index
    %39 = vector.load %arg9[%c0_26, %c0_27] : memref<4x4xf32, #tpu.memory_space<vmem>>, vector<4x4xf32>
    %cst_28 = arith.constant dense<0.000000e+00> : vector<4x512xf32>
    %40 = tpu.matmul %39, %33, %cst_28 {dimension_numbers = #tpu.dot_dimension_numbers<[1], [0], [0], [1], [0, 0, 1, 1], [], []>} : vector<4x4xf32>, vector<4x512xf32>, vector<4x512xf32> -> vector<4x512xf32>
    %41 = arith.addf %38, %40 : vector<4x512xf32>
    %c0_29 = arith.constant 0 : index
    %c0_30 = arith.constant 0 : index
    %42 = vector.load %arg11[%c0_29, %c0_30] : memref<4x4xf32, #tpu.memory_space<vmem>>, vector<4x4xf32>
    %cst_31 = arith.constant dense<0.000000e+00> : vector<4x512xf32>
    %43 = tpu.matmul %42, %36, %cst_31 {dimension_numbers = #tpu.dot_dimension_numbers<[1], [0], [0], [1], [0, 0, 1, 1], [], []>} : vector<4x4xf32>, vector<4x512xf32>, vector<4x512xf32> -> vector<4x512xf32>
    %44 = arith.addf %41, %43 : vector<4x512xf32>
    %c0_32 = arith.constant 0 : index
    %c0_33 = arith.constant 0 : index
    %45 = vector.load %arg12[%c0_32, %c0_33] : memref<4x1xf32, #tpu.memory_space<vmem>>, vector<4x1xf32>
    %46 = vector.broadcast %45 : vector<4x1xf32> to vector<4x512xf32>
    %47 = arith.addf %44, %46 : vector<4x512xf32>
    %cst_34 = arith.constant 0.000000e+00 : f32
    %48 = vector.broadcast %cst_34 : f32 to vector<4x512xf32>
    %49 = arith.maximumf %47, %48 : vector<4x512xf32>
    %c0_35 = arith.constant 0 : index
    %c0_36 = arith.constant 0 : index
    %50 = vector.load %arg13[%c0_35, %c0_36] : memref<16x4xf32, #tpu.memory_space<vmem>>, vector<16x4xf32>
    %cst_37 = arith.constant dense<0.000000e+00> : vector<16x512xf32>
    %51 = tpu.matmul %50, %49, %cst_37 {dimension_numbers = #tpu.dot_dimension_numbers<[1], [0], [0], [1], [0, 0, 1, 1], [], []>} : vector<16x4xf32>, vector<4x512xf32>, vector<16x512xf32> -> vector<16x512xf32>
    %c0_38 = arith.constant 0 : index
    %c0_39 = arith.constant 0 : index
    %52 = vector.load %arg14[%c0_38, %c0_39] : memref<16x1xf32, #tpu.memory_space<vmem>>, vector<16x1xf32>
    %53 = vector.broadcast %52 : vector<16x1xf32> to vector<16x512xf32>
    %54 = arith.addf %51, %53 : vector<16x512xf32>
    %c0_40 = arith.constant 0 : index
    %c0_41 = arith.constant 0 : index
    %55 = vector.load %arg15[%c0_40, %c0_41] : memref<16x512xf32, #tpu.memory_space<vmem>>, vector<16x512xf32>
    tpu.vector_store %arg15[%c0_40, %c0_41], %54 {strides = array<i32>} : memref<16x512xf32, #tpu.memory_space<vmem>>, vector<16x512xf32>,
    return
  }
  func.func @transform_0(%arg0: i32) -> (i32, i32) {
    %c0_i32 = arith.constant 0 : i32
    %c0_i32_0 = arith.constant 0 : i32
    %c0_i32_1 = arith.constant 0 : i32
    return %c0_i32, %c0_i32_0 : i32, i32
  }
  func.func @transform_1(%arg0: i32) -> (i32, i32) {
    %c0_i32 = arith.constant 0 : i32
    %c0_i32_0 = arith.constant 0 : i32
    %c0_i32_1 = arith.constant 0 : i32
    return %c0_i32, %c0_i32_0 : i32, i32
  }
  func.func @transform_2(%arg0: i32) -> (i32, i32) {
    %c0_i32 = arith.constant 0 : i32
    %c0_i32_0 = arith.constant 0 : i32
    %c0_i32_1 = arith.constant 0 : i32
    return %c0_i32, %c0_i32_0 : i32, i32
  }
  func.func @transform_3(%arg0: i32) -> (i32, i32) {
    %c0_i32 = arith.constant 0 : i32
    %c0_i32_0 = arith.constant 0 : i32
    %c0_i32_1 = arith.constant 0 : i32
    return %c0_i32, %c0_i32_0 : i32, i32
  }
  func.func @transform_4(%arg0: i32) -> (i32, i32) {
    %c0_i32 = arith.constant 0 : i32
    %c0_i32_0 = arith.constant 0 : i32
    %c0_i32_1 = arith.constant 0 : i32
    return %c0_i32, %c0_i32_0 : i32, i32
  }
  func.func @transform_5(%arg0: i32) -> (i32, i32) {
    %c0_i32 = arith.constant 0 : i32
    %c0_i32_0 = arith.constant 0 : i32
    %c0_i32_1 = arith.constant 0 : i32
    return %c0_i32, %c0_i32_0 : i32, i32
  }
  func.func @transform_6(%arg0: i32) -> (i32, i32) {
    %c0_i32 = arith.constant 0 : i32
    %c0_i32_0 = arith.constant 0 : i32
    %c0_i32_1 = arith.constant 0 : i32
    return %c0_i32, %c0_i32_0 : i32, i32
  }
  func.func @transform_7(%arg0: i32) -> (i32, i32) {
    %c0_i32 = arith.constant 0 : i32
    %c0_i32_0 = arith.constant 0 : i32
    %c0_i32_1 = arith.constant 0 : i32
    return %c0_i32, %c0_i32_0 : i32, i32
  }
  func.func @transform_8(%arg0: i32) -> (i32, i32) {
    %c0_i32 = arith.constant 0 : i32
    %c0_i32_0 = arith.constant 0 : i32
    %c0_i32_1 = arith.constant 0 : i32
    return %c0_i32, %c0_i32_0 : i32, i32
  }
  func.func @transform_9(%arg0: i32) -> (i32, i32) {
    %c0_i32 = arith.constant 0 : i32
    %c0_i32_0 = arith.constant 0 : i32
    %c0_i32_1 = arith.constant 0 : i32
    return %c0_i32, %c0_i32_0 : i32, i32
  }
  func.func @transform_10(%arg0: i32) -> (i32, i32) {
    %c0_i32 = arith.constant 0 : i32
    %c0_i32_0 = arith.constant 0 : i32
    %c0_i32_1 = arith.constant 0 : i32
    return %c0_i32, %c0_i32_0 : i32, i32
  }
  func.func @transform_11(%arg0: i32) -> (i32, i32) {
    %c0_i32 = arith.constant 0 : i32
    %c0_i32_0 = arith.constant 0 : i32
    %c0_i32_1 = arith.constant 0 : i32
    return %c0_i32, %c0_i32_0 : i32, i32
  }
  func.func @transform_12(%arg0: i32) -> (i32, i32) {
    %c0_i32 = arith.constant 0 : i32
    %c0_i32_0 = arith.constant 0 : i32
    %c0_i32_1 = arith.constant 0 : i32
    return %c0_i32, %c0_i32_0 : i32, i32
  }
  func.func @transform_13(%arg0: i32) -> (i32, i32) {
    %c0_i32 = arith.constant 0 : i32
    %c0_i32_0 = arith.constant 0 : i32
    %c0_i32_1 = arith.constant 0 : i32
    return %c0_i32, %c0_i32_0 : i32, i32
  }
  func.func @transform_14(%arg0: i32) -> (i32, i32) {
    %c0_i32 = arith.constant 0 : i32
    %c0_i32_0 = arith.constant 0 : i32
    %c0_i32_1 = arith.constant 0 : i32
    return %c0_i32, %c0_i32_0 : i32, i32
  }
}

</mosaic_0001>

<bundles_post_ra>
// kernel: tpu_custom_call.1
= control target key start
LH: loop header
LB: loop body
LE: loop exit
PB: predicated region body
PF: predicated region fallthrough
CT: control target
= control target key end

     0   :  { %vm72_vm0 = vcmask 1043456   ;;  %v1681_v4 = vmov 0.0   ;;  %s1959_s0 = inlined_call_operand.vmem [shape: f32[4,512], index: 0, kind: input, shape index: {}]   ;;  %s1960_s1 = inlined_call_operand.vmem [shape: f32[4,512], index: 1, kind: input, shape index: {}]   ;;  %s1961_s2 = inlined_call_operand.vmem [shape: f32[4,4], index: 2, kind: input, shape index: {}]   ;;  %s1962_s3 = inlined_call_operand.vmem [shape: f32[4,1], index: 3, kind: input, shape index: {}]   ;;  %s1963_s4 = inlined_call_operand.vmem [shape: f32[4,4], index: 4, kind: input, shape index: {}]   ;;  %s1964_s5 = inlined_call_operand.vmem [shape: f32[4,4], index: 5, kind: input, shape index: {}]   ;;  %s1965_s6 = inlined_call_operand.vmem [shape: f32[4,4], index: 6, kind: input, shape index: {}]   ;;  %s1966_s7 = inlined_call_operand.vmem [shape: f32[4,1], index: 7, kind: input, shape index: {}]   ;;  %s1967_s8 = inlined_call_operand.vmem [shape: f32[4,4], index: 8, kind: input, shape index: {}]   ;;  %s1968_s9 = inlined_call_operand.vmem [shape: f32[4,4], index: 9, kind: input, shape index: {}]   ;;  %s1969_s10 = inlined_call_operand.vmem [shape: f32[4,4], index: 10, kind: input, shape index: {}]   ;;  %s1970_s11 = inlined_call_operand.vmem [shape: f32[4,1], index: 11, kind: input, shape index: {}]   ;;  %s1971_s12 = inlined_call_operand.vmem [shape: f32[16,4], index: 12, kind: input, shape index: {}]   ;;  %s1972_s13 = inlined_call_operand.vmem [shape: f32[16,1], index: 13, kind: input, shape index: {}]   ;;  %s1973_s14 = inlined_call_operand.hbm [shape: f32[16,512], index: 14, kind: output, shape index: {}]  }
   0x1   :  { %v48_v0 = vld [vmem:[%s1959_s0] sm:$0xff]  ;;  %v49_v1 = vld [vmem:[%s1959_s0 + $0x8] sm:$0xff]  ;;  %145 = vmatprep.mubr.f32.mxu0 %v1681_v4  ;;  %216 = vmatprep.mubr.f32.mxu1 %v1681_v4 }
   0x2   :  { %v66_v2 = vcombine.high %v48_v0, %v48_v0  ;;  %v67_v3 = vcombine.high %v49_v1, %v49_v1 }
   0x3   :  { %19 = vsyncpa [#allocation3], 0  ;;  %v57_v5 = vld [vmem:[%s1961_s2] sm:$0xf]  ;;  %vm68_vm1 = vcmask 31744   ;;  %v1682_v6 = vmov 0   ;;  %v235_v22 = vlaneseq }
   0x4   :  { %1653 = vset.pattern.permute.xlu0 %v1682_v6  ;;  %1654 = vset.pattern.permute.xlu1 %v1682_v6  ;;  %v58_v7 = vld [vmem:[%s1962_s3] sm:$0xf]  ;;  %s1683_s2 = smov 16   ;;  %s1684_s3 = smov 112  }
   0x5   :  { %1578 = vmatprep.subr.msk.mxu0 %vm72_vm0, %v66_v2  ;;  %1581 = vmatprep.subr.msk.mxu1 %vm72_vm0, %v67_v3  ;;  %v783_v21 = vld [vmem:[%s1966_s7] sm:$0xf]  ;;  %v244_v23 = vshrl.u32 %v235_v22, 7  ;;  %v1790_v24 = vand.u32 127, %v235_v22  ;;  %s1686_s29 = smov 127  }
   0x6   :  { %1579 = vmatpush1.msk.msra.mxu0 %vm72_vm0, %v48_v0  ;;  %1582 = vmatpush1.msk.msra.mxu1 %vm72_vm0, %v49_v1  ;;  %v50_v26 = vld [vmem:[%s1960_s1] ss:$4 sm:$0xf]  ;;  %v1575_v48 = vld [vmem:[%s1960_s1 + $0x1] ss:$4 sm:$0xf] }
   0x7   :  { %1580 = vmatmul.mubr.msk.f32.vlgmr.msra.gmra.mrb[0].mxu0 %vm68_vm1, %v57_v5  ;;  %1583 = vmatmul.mubr.msk.f32.vlgmr.msra.gmra.mrb[0].mxu1 %vm68_vm1, %v57_v5  ;;  %v1792_v25 = vsub.s32 1, %v244_v23  ;;  %v1797_v27 = vsub.s32 0, %v244_v23  ;;  %vm237_vm2 = vcmp.lt.s32.totalorder %v1790_v24, 16  ;;  %v1801_v29 = vsub.s32 2, %v244_v23  ;;  %v306_v44 = vld [vmem:[%s1963_s4] sm:$0xf] }
   0x8   :  { %61 = vperm.xlu0 %1653, %v58_v7   ;;  %386 = vmatprep.mubr.f32.mxu0 %v1681_v4  ;;  %v1803_v30 = vsub.s32 3, %v244_v23  ;;  %vm275_vm3 = vcmp.lt.s32.totalorder %v1790_v24, 112  ;;  %v305_v60 = vld [vmem:[%s1964_s5] sm:$0xf]  ;;  %vm805_vm4 = vcmp.lt.s32.totalorder %v1790_v24, 1  ;;  %vm843_vm5 = vcmp.lt.s32.totalorder %v1790_v24, 127 }
   0x9   :  { %457 = vmatprep.mubr.f32.mxu1 %v1681_v4  ;;  %v250_v28 = vrot.slane %v50_v26, %v1792_v25  ;;  %v246_v34 = vrot.slane %v50_v26, %v1797_v27  ;;  %v254_v36 = vrot.slane %v50_v26, %v1801_v29  ;;  %v288_v51 = vrot.slane %v1575_v48, %v1792_v25  ;;  %v621_v1 = vld [vmem:[%s1965_s6] sm:$0xf]  ;;  %s1685_s6 = smov 1  }
   0xa   :  { %v258_v37 = vrot.slane %v50_v26, %v1803_v30  ;;  %v296_v50 = vrot.slane %v1575_v48, %v1803_v30  ;;  %v284_v52 = vrot.slane %v1575_v48, %v1797_v27  ;;  %v292_v58 = vrot.slane %v1575_v48, %v1801_v29  ;;  %v1189_v24 = vld [vmem:[%s1969_s10] sm:$0xf] }
  0x87   :  { %v62_v8 = vpop.permute.xlu0 %61 }
  0xda   :  { %v147_v9 = vpop.f32.mrb[0].mxu0  ;;  %v218_v10 = vpop.f32.mrb[0].mxu1 }
  0xdb   :  { %v148_v11 = vadd.f32 %v147_v9, %v62_v8  ;;  %v149_v12 = vpop.f32.mrb[1].mxu0  ;;  %v220_v13 = vpop.f32.mrb[1].mxu1  ;;  %v219_v17 = vadd.f32 %v218_v10, %v62_v8 }
  0xdc   :  { %v150_v14 = vadd.f32 %v149_v12, %v62_v8  ;;  %v221_v16 = vadd.f32 %v220_v13, %v62_v8 }
  0xdd   :  { %v223_v15 = vmax.f32 %v148_v11, 0.0  ;;  %v225_v20 = vmax.f32 %v219_v17, 0.0  ;;  %v1367_v17 = vld [vmem:[%s1972_s13] sm:$0xff] }
  0xde   :  { %v224_v18 = vmax.f32 %v150_v14, 0.0  ;;  %v226_v19 = vmax.f32 %v221_v16, 0.0  ;;  %v1351_v16 = vld [vmem:[%s1970_s11] sm:$0xf] }
  0xdf   :  { %227 = vrot.lane.b32.xlu0 %v223_v15, %s1683_s2 }
  0xe0   :  { %229 = vrot.lane.b32.xlu1 %v224_v18, %s1683_s2 }
  0xe3   :  { %233 = vrot.lane.b32.xlu0 %v226_v19, %s1683_s2 }
  0xe4   :  { %231 = vrot.lane.b32.xlu1 %v225_v20, %s1683_s2 }
  0xe7   :  { %269 = vrot.lane.b32.xlu0 %v224_v18, %s1684_s3 }
  0xe8   :  { %267 = vrot.lane.b32.xlu1 %v223_v15, %s1684_s3 }
  0xeb   :  { %273 = vrot.lane.b32.xlu0 %v226_v19, %s1684_s3 }
  0xec   :  { %271 = vrot.lane.b32.xlu1 %v225_v20, %s1684_s3 }
  0xf0   :  { %786 = vperm.xlu1 %1654, %v783_v21  }
 0x151   :  { %v228_v31 = vpop.permute.xlu0 %227 }
 0x152   :  { %v230_v32 = vpop.permute.xlu1 %229 }
 0x153   :  { %v240_v33 = vsel %vm237_vm2, %v228_v31, %v230_v32 }
 0x154   :  { %v264_v35 = vmul.f32 %v250_v28, %v240_v33 }
 0x155   :  { %v234_v38 = vpop.permute.xlu0 %233 }
 0x156   :  { %v241_v39 = vsel %vm237_vm2, %v234_v38, %v228_v31  ;;  %v232_v40 = vpop.permute.xlu1 %231  ;;  %1584 = vmatprep.subr.msk.mxu0 %vm72_vm0, %v264_v35 }
 0x157   :  { %v263_v41 = vmul.f32 %v246_v34, %v241_v39  ;;  %v238_v42 = vsel %vm237_vm2, %v232_v40, %v234_v38  ;;  %v239_v43 = vsel %vm237_vm2, %v230_v32, %v232_v40  ;;  %v874_v40 = vld [vmem:[%s1967_s8] sm:$0xf] }
 0x158   :  { %v265_v45 = vmul.f32 %v254_v36, %v239_v43  ;;  %v266_v46 = vmul.f32 %v258_v37, %v238_v42  ;;  %v1577_v43 = vld [vmem:[%s1960_s1 + $0x3] ss:$4 sm:$0xf] }
 0x159   :  { %1585 = vmatpush1.msk.msra.mxu0 %vm72_vm0, %v263_v41  ;;  %v270_v47 = vpop.permute.xlu0 %269  ;;  %v852_v48 = vrot.slane %v1577_v43, %v1797_v27 }
 0x15a   :  { %v268_v49 = vpop.permute.xlu1 %267  ;;  %1586 = vmatmul.mubr.msk.f32.vlgmr.msra.gmra.mrb[2].mxu0 %vm68_vm1, %v306_v44  ;;  %1587 = vmatprep.subr.msk.mxu1 %vm72_vm0, %v266_v46  ;;  %v864_v46 = vrot.slane %v1577_v43, %v1803_v30 }
 0x15b   :  { %1590 = vmatprep.subr.msk.mxu0 %vm72_vm0, %v224_v18  ;;  %1588 = vmatpush1.msk.msra.mxu1 %vm72_vm0, %v265_v45  ;;  %v278_v54 = vsel %vm275_vm3, %v268_v49, %v270_v47  ;;  %v1368_v18 = vld [vmem:[%s1972_s13 + $0x8] sm:$0xff]  ;;  %v856_v45 = vrot.slane %v1577_v43, %v1792_v25 }
 0x15c   :  { %1591 = vmatpush1.msk.msra.mxu0 %vm72_vm0, %v223_v15  ;;  %1589 = vmatmul.mubr.msk.f32.vlgmr.msra.gmra.mrb[2].mxu1 %vm68_vm1, %v306_v44  ;;  %v301_v63 = vmul.f32 %v284_v52, %v278_v54  ;;  %v873_v54 = vld [vmem:[%s1968_s9] sm:$0xf] }
 0x15d   :  { %1593 = vmatprep.subr.msk.mxu1 %vm72_vm0, %v226_v19  ;;  %v274_v53 = vpop.permute.xlu0 %273  ;;  %543 = vmatprep.mubr.f32.mxu0 %v1681_v4  ;;  %v1576_v19 = vld [vmem:[%s1960_s1 + $0x2] ss:$4 sm:$0xf] }
 0x15e   :  { %1594 = vmatpush1.msk.msra.mxu1 %vm72_vm0, %v225_v20  ;;  %v279_v55 = vsel %vm275_vm3, %v274_v53, %v268_v49  ;;  %v272_v56 = vpop.permute.xlu1 %271  ;;  %614 = vmatprep.mubr.f32.mxu1 %v1681_v4  ;;  %v818_v20 = vrot.slane %v1576_v19, %v1792_v25  ;;  %v814_v28 = vrot.slane %v1576_v19, %v1797_v27 }
 0x15f   :  { %v304_v57 = vmul.f32 %v296_v50, %v279_v55  ;;  %v277_v59 = vsel %vm275_vm3, %v270_v47, %v272_v56  ;;  %v276_v61 = vsel %vm275_vm3, %v272_v56, %v274_v53  ;;  %v826_v31 = vrot.slane %v1576_v19, %v1803_v30 }
 0x160   :  { %v302_v62 = vmul.f32 %v288_v51, %v277_v59  ;;  %v303_v0 = vmul.f32 %v292_v58, %v276_v61  ;;  %v822_v32 = vrot.slane %v1576_v19, %v1801_v29  ;;  %v860_v30 = vrot.slane %v1577_v43, %v1801_v29 }
 0x161   :  { %1599 = vmatprep.subr.msk.mxu1 %vm72_vm0, %v304_v57 }
 0x162   :  { %1592 = vmatmul.mubr.msk.f32.vlgmr.msra.gmra.mrb[2].mxu0 %vm68_vm1, %v305_v60  ;;  %1596 = vmatprep.subr.msk.mxu0 %vm72_vm0, %v302_v62 }
 0x163   :  { %1597 = vmatpush1.msk.msra.mxu0 %vm72_vm0, %v301_v63  ;;  %701 = vmatprep.mubr.f32.mxu0 %v1681_v4 }
 0x164   :  { %1595 = vmatmul.mubr.msk.f32.vlgmr.msra.gmra.mrb[2].mxu1 %vm68_vm1, %v305_v60 }
 0x165   :  { %1600 = vmatpush1.msk.msra.mxu1 %vm72_vm0, %v303_v0  ;;  %772 = vmatprep.mubr.f32.mxu1 %v1681_v4 }
 0x16a   :  { %1598 = vmatmul.mubr.msk.f32.vlgmr.msra.gmra.mrb[2].mxu0 %vm68_vm1, %v621_v1 }
 0x16b   :  { %954 = vmatprep.mubr.f32.mxu0 %v1681_v4 }
 0x16c   :  { %1601 = vmatmul.mubr.msk.f32.vlgmr.msra.gmra.mrb[2].mxu1 %vm68_vm1, %v621_v1 }
 0x16d   :  { %1025 = vmatprep.mubr.f32.mxu1 %v1681_v4 }
 0x16f   :  { %v787_v2 = vpop.permute.xlu1 %786 }
 0x23d   :  { %v703_v3 = vpop.f32.mrb[2].mxu0 }
 0x23e   :  { %v789_v5 = vadd.f32 %v787_v2, %v703_v3  ;;  %v705_v6 = vpop.f32.mrb[3].mxu0 }
 0x23f   :  { %v790_v7 = vadd.f32 %v787_v2, %v705_v6  ;;  %v774_v8 = vpop.f32.mrb[2].mxu1 }
 0x240   :  { %v793_v9 = vmax.f32 %v789_v5, 0.0  ;;  %v791_v10 = vadd.f32 %v787_v2, %v774_v8  ;;  %v776_v11 = vpop.f32.mrb[3].mxu1  ;;  %v1365_v5 = vld [vmem:[%s1971_s12] sm:$0xff] }
 0x241   :  { %v794_v12 = vmax.f32 %v790_v7, 0.0  ;;  %v792_v13 = vadd.f32 %v787_v2, %v776_v11  ;;  %v1366_v7 = vld [vmem:[%s1971_s12 + $0x8] sm:$0xff]  ;;  %s1687_s12 = smov [#allocation2]  }
 0x242   :  { %797 = vrot.lane.b32.xlu0 %v793_v9, %s1685_s6  ;;  %v795_v14 = vmax.f32 %v791_v10, 0.0  ;;  %s1564_s24 = sshll.u32 %s1687_s12, 4  ;;  %s1565_s24 = int_to_ptr.vmem [resolvable:$true] %s1564_s24 }
 0x243   :  { %799 = vrot.lane.b32.xlu1 %v794_v12, %s1685_s6  ;;  %v796_v15 = vmax.f32 %v792_v13, 0.0  ;;  %s1657_s25 = scalar_lea.vmem %s1565_s24, 1024  ;;  %p1662_p1 = scmp.lt.s32.totalorder %s1565_s24, %s1565_s24 }
 0x244   :  { %p1658_p0 = scmp.ne.s32.totalorder %s1565_s24, %s1657_s25  ;;  %p1663_p2 = scmp.lt.s32.totalorder %s1657_s25, %s1657_s25 }
 0x246   :  { %801 = vrot.lane.b32.xlu0 %v795_v14, %s1685_s6  ;;  %p1664_p3 = por %p1663_p2, %p1662_p1 }
 0x247   :  { %803 = vrot.lane.b32.xlu1 %v796_v15, %s1685_s6 }
 0x248   :  { %p1665_p4 = pnand %p1664_p3, %p1658_p0 }
 0x24a   :  { %835 = vrot.lane.b32.xlu0 %v793_v9, %s1686_s29 }
 0x24b   :  { %837 = vrot.lane.b32.xlu1 %v794_v12, %s1686_s29 }
 0x24e   :  { %839 = vrot.lane.b32.xlu0 %v795_v14, %s1686_s29 }
 0x24f   :  { %841 = vrot.lane.b32.xlu1 %v796_v15, %s1686_s29 }
 0x252   :  { %1354 = vperm.xlu0 %1653, %v1351_v16  }
 0x253   :  { %1371 = vperm.xlu1 %1654, %v1367_v17  }
 0x256   :  { %1376 = vperm.xlu0 %1653, %v1368_v18  }
 0x2b4   :  { %v798_v21 = vpop.permute.xlu0 %797 }
 0x2b5   :  { %v800_v22 = vpop.permute.xlu1 %799 }
 0x2b6   :  { %v808_v23 = vsel %vm805_vm4, %v798_v21, %v800_v22 }
 0x2b7   :  { %v832_v26 = vmul.f32 %v818_v20, %v808_v23 }
 0x2b8   :  { %v802_v33 = vpop.permute.xlu0 %801 }
 0x2b9   :  { %v807_v34 = vsel %vm805_vm4, %v800_v22, %v802_v33  ;;  %v804_v35 = vpop.permute.xlu1 %803  ;;  %1602 = vmatprep.subr.msk.mxu0 %vm72_vm0, %v832_v26 }
 0x2ba   :  { %v806_v36 = vsel %vm805_vm4, %v802_v33, %v804_v35  ;;  %v809_v37 = vsel %vm805_vm4, %v804_v35, %v798_v21  ;;  %v833_v41 = vmul.f32 %v822_v32, %v807_v34 }
 0x2bb   :  { %v831_v38 = vmul.f32 %v814_v28, %v809_v37  ;;  %v834_v39 = vmul.f32 %v826_v31, %v806_v36 }
 0x2bc   :  { %v836_v42 = vpop.permute.xlu0 %835 }
 0x2bd   :  { %v838_v44 = vpop.permute.xlu1 %837  ;;  %1603 = vmatpush1.msk.msra.mxu0 %vm72_vm0, %v831_v38  ;;  %1605 = vmatprep.subr.msk.mxu1 %vm72_vm0, %v834_v39 }
 0x2be   :  { %1604 = vmatmul.mubr.msk.f32.vlgmr.msra.gmra.mrb[4].mxu0 %vm68_vm1, %v874_v40  ;;  %1606 = vmatpush1.msk.msra.mxu1 %vm72_vm0, %v833_v41  ;;  %v846_v50 = vsel %vm843_vm5, %v836_v42, %v838_v44 }
 0x2bf   :  { %1608 = vmatprep.subr.msk.mxu0 %vm72_vm0, %v794_v12  ;;  %1607 = vmatmul.mubr.msk.f32.vlgmr.msra.gmra.mrb[4].mxu1 %vm68_vm1, %v874_v40  ;;  %v869_v55 = vmul.f32 %v852_v48, %v846_v50 }
 0x2c0   :  { %1609 = vmatpush1.msk.msra.mxu0 %vm72_vm0, %v793_v9  ;;  %1611 = vmatprep.subr.msk.mxu1 %vm72_vm0, %v796_v15  ;;  %v840_v47 = vpop.permute.xlu0 %839 }
 0x2c1   :  { %1612 = vmatpush1.msk.msra.mxu1 %vm72_vm0, %v795_v14  ;;  %v845_v25 = vsel %vm843_vm5, %v838_v44, %v840_v47  ;;  %v842_v49 = vpop.permute.xlu1 %841  ;;  %1111 = vmatprep.mubr.f32.mxu0 %v1681_v4 }
 0x2c2   :  { %v870_v51 = vmul.f32 %v856_v45, %v845_v25  ;;  %v847_v52 = vsel %vm843_vm5, %v842_v49, %v836_v42  ;;  %1182 = vmatprep.mubr.f32.mxu1 %v1681_v4  ;;  %v844_v27 = vsel %vm843_vm5, %v840_v47, %v842_v49 }
 0x2c3   :  { %v872_v53 = vmul.f32 %v864_v46, %v847_v52  ;;  %v871_v56 = vmul.f32 %v860_v30, %v844_v27 }
 0x2c4   :  { %1614 = vmatprep.subr.msk.mxu0 %vm72_vm0, %v870_v51 }
 0x2c5   :  { %1617 = vmatprep.subr.msk.mxu1 %vm72_vm0, %v872_v53 }
 0x2c6   :  { %1610 = vmatmul.mubr.msk.f32.vlgmr.msra.gmra.mrb[4].mxu0 %vm68_vm1, %v873_v54 }
 0x2c7   :  { %1615 = vmatpush1.msk.msra.mxu0 %vm72_vm0, %v869_v55  ;;  %1613 = vmatmul.mubr.msk.f32.vlgmr.msra.gmra.mrb[4].mxu1 %vm68_vm1, %v873_v54 }
 0x2c8   :  { %1618 = vmatpush1.msk.msra.mxu1 %vm72_vm0, %v871_v56  ;;  %1269 = vmatprep.mubr.f32.mxu0 %v1681_v4 }
 0x2c9   :  { %1340 = vmatprep.mubr.f32.mxu1 %v1681_v4 }
 0x2ce   :  { %1616 = vmatmul.mubr.msk.f32.vlgmr.msra.gmra.mrb[4].mxu0 %vm68_vm1, %v1189_v24 }
 0x2cf   :  { %1619 = vmatmul.mubr.msk.f32.vlgmr.msra.gmra.mrb[4].mxu1 %vm68_vm1, %v1189_v24  ;;  %1461 = vmatprep.mubr.f32.mxu0 %v1681_v4 }
 0x2d0   :  { %1538 = vmatprep.mubr.f32.mxu1 %v1681_v4 }
 0x2d1   :  { %v1355_v29 = vpop.permute.xlu0 %1354 }
 0x2d2   :  { %v1372_v8 = vpop.permute.xlu1 %1371 }
 0x2d5   :  { %v1377_v17 = vpop.permute.xlu0 %1376 }
 0x3a1   :  { %v1271_v57 = vpop.f32.mrb[4].mxu0 }
 0x3a2   :  { %v1357_v58 = vadd.f32 %v1355_v29, %v1271_v57  ;;  %v1273_v59 = vpop.f32.mrb[5].mxu0  ;;  %v1342_v60 = vpop.f32.mrb[4].mxu1 }
 0x3a3   :  { %v1358_v61 = vadd.f32 %v1355_v29, %v1273_v59  ;;  %v1359_v62 = vadd.f32 %v1355_v29, %v1342_v60  ;;  %v1344_v63 = vpop.f32.mrb[5].mxu1 }
 0x3a4   :  { %v1360_v0 = vadd.f32 %v1355_v29, %v1344_v63  ;;  %v1361_v2 = vmax.f32 %v1357_v58, 0.0 }
 0x3a5   :  { %v1362_v1 = vmax.f32 %v1358_v61, 0.0  ;;  %v1363_v6 = vmax.f32 %v1359_v62, 0.0 }
 0x3a6   :  { %v1364_v3 = vmax.f32 %v1360_v0, 0.0 }
 0x3a7   :  { %1620 = vmatprep.subr.msk.mxu0 %vm72_vm0, %v1362_v1 }
 0x3a8   :  { %1621 = vmatpush1.msk.msra.mxu0 %vm72_vm0, %v1361_v2  ;;  %1624 = vmatprep.subr.msk.mxu1 %vm72_vm0, %v1364_v3 }
 0x3a9   :  { %1622 = vmatmul.mubr.msk.f32.vlgmr.msra.gmra.mrb[6].mxu0 %vm68_vm1, %v1365_v5  ;;  %1625 = vmatpush1.msk.msra.mxu1 %vm72_vm0, %v1363_v6 }
 0x3aa   :  { %1626 = vmatmul.mubr.msk.f32.vlgmr.msra.gmra.mrb[6].mxu1 %vm68_vm1, %v1365_v5  ;;  %1467 = vmatprep.mubr.f32.mxu0 %v1681_v4 }
 0x3ab   :  { %1544 = vmatprep.mubr.f32.mxu1 %v1681_v4 }
 0x3ad   :  { %1623 = vmatmul.mubr.msk.f32.gmra.mrb[8].mxu0 %vm68_vm1, %v1366_v7 }
 0x3ae   :  { %1627 = vmatmul.mubr.msk.f32.gmra.mrb[8].mxu1 %vm68_vm1, %v1366_v7 }
 0x47c   :  { %v1463_v9 = vpop.f32.mrb[6].mxu0 }
 0x47d   :  { %v1464_v10 = vadd.f32 %v1463_v9, %v1372_v8  ;;  %v1465_v11 = vpop.f32.mrb[7].mxu0  ;;  %v1540_v12 = vpop.f32.mrb[6].mxu1 }
 0x47e   :  { %v1466_v13 = vadd.f32 %v1465_v11, %v1372_v8  ;;  %v1541_v14 = vadd.f32 %v1540_v12, %v1372_v8  ;;  %v1542_v15 = vpop.f32.mrb[7].mxu1 }
 0x47f   :  { %1551 = vst [vmem:[#allocation2] sm:$0xff] %v1464_v10  ;;  %v1543_v16 = vadd.f32 %v1542_v15, %v1372_v8 }
 0x480   :  { %1552 = vst [vmem:[#allocation2 + $0x8] sm:$0xff] %v1466_v13  ;;  %1553 = vst [vmem:[#allocation2 + $0x10] sm:$0xff] %v1541_v14  ;;  %v1469_v18 = vpop.f32.mrb[8].mxu0 }
 0x481   :  { %1554 = vst [vmem:[#allocation2 + $0x18] sm:$0xff] %v1543_v16  ;;  %v1470_v4 = vadd.f32 %v1469_v18, %v1377_v17  ;;  %v1471_v19 = vpop.f32.mrb[9].mxu0  ;;  %v1546_v20 = vpop.f32.mrb[8].mxu1 }
 0x482   :  { %v1472_v21 = vadd.f32 %v1471_v19, %v1377_v17  ;;  %v1547_v22 = vadd.f32 %v1546_v20, %v1377_v17  ;;  %v1548_v23 = vpop.f32.mrb[9].mxu1 }
 0x483   :  { %1555 = vst [vmem:[#allocation2 + $0x20] sm:$0xff] %v1470_v4  ;;  %v1549_v26 = vadd.f32 %v1548_v23, %v1377_v17 }
 0x484   :  { %1556 = vst [vmem:[#allocation2 + $0x28] sm:$0xff] %v1472_v21  ;;  %1557 = vst [vmem:[#allocation2 + $0x30] sm:$0xff] %v1547_v22 }
 0x485   :  { %1558 = vst [vmem:[#allocation2 + $0x38] sm:$0xff] %v1549_v26 }
 0x486   :  { %1668 = shalt.err (!%p1665_p4)
}
 0x487   :  { %s1669_s27 = scalar_lea.hbm %s1973_s14, 1024 }
 0x488   :  { %p1670_p5 = scmp.ne.s32.totalorder %s1973_s14, %s1669_s27  ;;  %p1673_p6 = scmp.lt.u32.totalorder %s1669_s27, %s1973_s14 }
 0x48a   :  { %p1675_p7 = pnand %p1673_p6, %p1670_p5 }
 0x48c   :  { %1678 = shalt.err (!%p1675_p7)
}
 0x48d   :  { %s1688_s30 = smov 512   ;;  %s1689_s15 = smov 32  }
 0x48e   :  { %1570 = dma.vmem_to_hbm [thread:$0]  %s1565_s24, 1024, %s1973_s14, [#allocation3], %s1688_s30, %s1688_s30, %s1689_s15  }
 0x48f   :  { %1679 = dma.done.wait [#allocation3], 1024  }
 0x490   :  { %1680 = vsyncadd [#allocation3], 4294966272 }
 0x491   :  { %1574 = vsyncpa [#allocation3], 1 }

</bundles_post_ra>
